<compile_context>
chip_gen: v6e
topology: v6e:2x2x1
jax: 0.10.0
libtpu: 0.0.40
codegen_flags: <defaults>
</compile_context>

<pallas_src>
import functools

import jax
import jax.numpy as jnp
from jax import lax
from jax.experimental import pallas as pl
from jax.experimental.pallas import tpu as pltpu


# ----------------------------------------------------------------------------
# Trace-time constants: composed pooling matrices.
# ----------------------------------------------------------------------------
def _pool_matrix(size_in: int) -> jnp.ndarray:
    """(size_out, size_in) 0/1 matrix of one AvgPool2d(3, s=2, p=1) stage."""
    size_out = (size_in - 1) // 2 + 1
    oi = jnp.arange(size_out)[:, None]
    ii = jnp.arange(size_in)[None, :]
    return (jnp.abs(ii - 2 * oi) <= 1).astype(jnp.float32)


def _composed_pool_matrix(size_in: int, ratio: int) -> jnp.ndarray:
    """P_total = P_r @ ... @ P_1, shape (size_after_ratio_stages, size_in), f32."""
    m = jnp.eye(size_in, dtype=jnp.float32)
    cur = size_in
    for _ in range(ratio):
        p = _pool_matrix(cur)
        m = p @ m
        cur = p.shape[0]
    return m


# ----------------------------------------------------------------------------
# Kernels.
# ----------------------------------------------------------------------------
def _fused_pool_kernel_2d(ph_ref, pw_ref, x_ref, o_ref, *, tb, h):
    # ph_ref: (Hf, H)    composed H-pooling matrix, 9**-ratio scale folded in
    # pw_ref: (Wf, W)    composed W-pooling matrix (unscaled)
    # x_ref : (tb*H, W)  tb images in natural NCHW row-major layout
    # o_ref : (tb, Hf, Wf)
    x = x_ref[...]
    ph = ph_ref[...]
    pw = pw_ref[...]
    hf = ph.shape[0]
    wf = pw.shape[0]

    # 1) W-contraction over the full-resolution block: ONE 2-D MXU matmul
    #    (tb*H, W) x (Wf, W)^T — this is the matmul that touches all the data.
    t = lax.dot_general(x, pw, (((1,), (1,)), ((), ())),
                        preferred_element_type=jnp.float32)          # (tb*H, Wf)
    t = t.astype(x.dtype)

    # 2) Layout-preserving leading-axis split (H % 8 == 0) + batched
    #    H-contraction on the 2**ratio-smaller intermediate.  Batched dot with
    #    both operands 3-D (broadcast Ph) is the guaranteed-lowerable form.
    t3 = t.reshape(tb, h, wf)                                        # (tb, H, Wf)
    ph_b = jnp.broadcast_to(ph, (tb, hf, h))                         # in VMEM budget
    o = lax.dot_general(ph_b, t3, (((2,), (1,)), ((0,), (0,))),
                        preferred_element_type=jnp.float32)          # (tb, Hf, Wf)
    o_ref[...] = o.astype(o_ref.dtype)


def _fused_pool_kernel_3d(ph_ref, pw_ref, x_ref, o_ref, *, tb):
    # Fallback for H % 8 != 0: (tb, H, W) block, both contractions fully batched
    # (no reshape at all).
    x = x_ref[...]                                                   # (tb, H, W)
    ph = ph_ref[...]
    pw = pw_ref[...]
    hf, h = ph.shape
    wf, w = pw.shape

    pw_b = jnp.broadcast_to(pw, (tb, wf, w))
    t3 = lax.dot_general(x, pw_b, (((2,), (2,)), ((0,), (0,))),
                         preferred_element_type=jnp.float32)         # (tb, H, Wf)
    t3 = t3.astype(x.dtype)

    ph_b = jnp.broadcast_to(ph, (tb, hf, h))
    o = lax.dot_general(ph_b, t3, (((2,), (1,)), ((0,), (0,))),
                        preferred_element_type=jnp.float32)          # (tb, Hf, Wf)
    o_ref[...] = o.astype(o_ref.dtype)


# ----------------------------------------------------------------------------
# VMEM-aware batch-tile picker.
# ----------------------------------------------------------------------------
def _vmem_capacity_bytes() -> int:
    try:
        return int(pltpu.get_tpu_info().vmem_capacity_bytes)
    except Exception:
        return 64 << 20          # conservative default (v7x per-TensorCore)


def _estimate_vmem(tb, h, w, hf, wf, itemsize, use_2d):
    in_blk = tb * h * w * itemsize            # input block (double-buffered)
    out_blk = tb * hf * wf * itemsize         # output block (double-buffered)
    mats = (hf * h + wf * w) * itemsize       # Ph / Pw blocks
    t_mid = tb * h * wf * (4 + itemsize)      # f32 intermediate + cast copy
    ph_b = tb * hf * h * itemsize             # broadcast Ph for batched dot
    pw_b = 0 if use_2d else tb * wf * w * itemsize
    o_f32 = tb * hf * wf * 4
    return 2 * in_blk + 2 * out_blk + 2 * mats + t_mid + ph_b + pw_b + o_f32


def _pick_batch_tile(b, h, w, hf, wf, itemsize, use_2d, vmem_budget):
    divisors = [d for d in range(1, b + 1) if b % d == 0]
    fits = [d for d in divisors
            if _estimate_vmem(d, h, w, hf, wf, itemsize, use_2d) <= vmem_budget]
    if not fits:
        # TODO(synk): spatially tile H (or use the per-stage 3-tap stencil) when
        # even a single image plus the dense Ph exceeds the VMEM budget.
        fits = [1]
    tb = max(fits)
    # Prefer >= 2 grid steps (pipeline overlap) if it costs at most 2x tile size.
    if tb == b and b > 1:
        alt = [d for d in fits if d < b]
        if alt and 2 * max(alt) >= tb:
            tb = max(alt)
    # Prefer an even step count (v7x: two TensorCores share the parallel axis).
    nb = b // tb
    if nb > 1 and nb % 2 == 1:
        alt = [d for d in fits if (b // d) % 2 == 0 and 2 * d >= tb]
        if alt:
            tb = max(alt)
    return tb, b // tb


# ----------------------------------------------------------------------------
# Wrapper: equivalent of InputInjection(ratio).forward(x), NCHW in / NCHW out.
# ----------------------------------------------------------------------------
def input_injection(x_nchw: jnp.ndarray, ratio: int) -> jnp.ndarray:
    if ratio == 0:
        return x_nchw

    n, c, h, w = x_nchw.shape
    b = n * c
    dtype = x_nchw.dtype
    itemsize = x_nchw.dtype.itemsize

    ph = _composed_pool_matrix(h, ratio)                 # (Hf, H) f32
    pw = _composed_pool_matrix(w, ratio)                 # (Wf, W) f32
    hf, wf = ph.shape[0], pw.shape[0]
    ph = (ph * (1.0 / (9.0 ** ratio))).astype(dtype)     # fold avg scale once
    pw = pw.astype(dtype)
    # TODO(synk): optional in-kernel bf16 cast of f32 inputs for large H on v5e
    # (emulated-f32 MXU); kept exact f32 by default.

    use_2d = (h % 8 == 0)

    vmem_cap = _vmem_capacity_bytes()
    vmem_limit = min(int(vmem_cap * 0.75), 112 << 20)
    tb, nb = _pick_batch_tile(b, h, w, hf, wf, itemsize, use_2d,
                              vmem_budget=int(vmem_limit * 0.9))
    need = _estimate_vmem(tb, h, w, hf, wf, itemsize, use_2d) + (4 << 20)
    vmem_limit = min(max(vmem_limit, need), int(vmem_cap * 0.95))

    if use_2d:
        x_in = x_nchw.reshape(b * h, w)                  # free, copy-less view
        kernel = functools.partial(_fused_pool_kernel_2d, tb=tb, h=h)
        x_spec = pl.BlockSpec((tb * h, w), lambda j: (j, 0))
    else:
        x_in = x_nchw.reshape(b, h, w)                   # free, copy-less view
        kernel = functools.partial(_fused_pool_kernel_3d, tb=tb)
        x_spec = pl.BlockSpec((tb, h, w), lambda j: (j, 0, 0))

    out = pl.pallas_call(
        kernel,
        out_shape=jax.ShapeDtypeStruct((b, hf, wf), dtype),
        grid_spec=pltpu.PrefetchScalarGridSpec(
            num_scalar_prefetch=0,
            grid=(nb,),
            in_specs=[
                pl.BlockSpec((hf, h), lambda j: (0, 0)),     # Ph (scaled)
                pl.BlockSpec((wf, w), lambda j: (0, 0)),     # Pw
                x_spec,                                      # tb images per step
            ],
            out_specs=pl.BlockSpec((tb, hf, wf), lambda j: (j, 0, 0)),
        ),
        compiler_params=pltpu.CompilerParams(
            dimension_semantics=("parallel",),
            vmem_limit_bytes=int(vmem_limit),
        ),
    )(ph, pw, x_in)

    return out.reshape(n, c, hf, wf)


# ----------------------------------------------------------------------------
# Pure-JAX reference (count_include_pad=True => divide by 9 each stage).
# ----------------------------------------------------------------------------
def _reference_input_injection(x_nchw: jnp.ndarray, ratio: int) -> jnp.ndarray:
    for _ in range(ratio):
        s = lax.reduce_window(
            x_nchw, 0.0, lax.add,
            window_dimensions=(1, 1, 3, 3),
            window_strides=(1, 1, 2, 2),
            padding=((0, 0), (0, 0), (1, 1), (1, 1)),
        )
        x_nchw = s / 9.0
    return x_nchw


if __name__ == "__main__":
    key = jax.random.PRNGKey(0)
    N, C, H, W = 2, 4, 16, 16
    x = jax.random.normal(key, (N, C, H, W), dtype=jnp.float32)

    fwd = jax.jit(input_injection, static_argnums=1)

    # f32: tight tolerance against the per-stage reference.
    for ratio in (1, 3):
        out = jax.block_until_ready(fwd(x, ratio))
        ref = _reference_input_injection(x, ratio)
        assert out.shape == ref.shape, (ratio, out.shape, ref.shape)
        assert jnp.allclose(out, ref, atol=1e-5, rtol=1e-5), f"mismatch ratio={ratio}"

    # bf16: bf16 MXU operands + composed-vs-per-stage rounding => looser tolerance.
    xb = x.astype(jnp.bfloat16)
    outb = jax.block_until_ready(fwd(xb, 1))
    refb = _reference_input_injection(xb.astype(jnp.float32), 1)
    assert outb.shape == refb.shape
    assert jnp.allclose(outb.astype(jnp.float32), refb, atol=5e-2, rtol=5e-2), "bf16 mismatch"

    print("KERNEL_OK")
</pallas_src>

<mosaic_0001>
module attributes {stable_mosaic.version = 11 : i64} {
  func.func @_fused_pool_kernel_2d(%arg0: i32, %arg1: memref<8x16xf32, #tpu.memory_space<vmem>>, %arg2: memref<8x16xf32, #tpu.memory_space<vmem>>, %arg3: memref<64x16xf32, #tpu.memory_space<vmem>>, %arg4: memref<4x8x8xf32, #tpu.memory_space<vmem>>) attributes {dimension_semantics = [#tpu.dimension_semantics<parallel>], iteration_bounds = array<i64: 2>, scalar_prefetch = 0 : i64, scratch_operands = 0 : i64, tpu.core_type = #tpu.core_type<tc>, window_params = [{pipeline_mode = #tpu.pipeline_mode<synchronous>, transform_indices = @transform_0, window_bounds = array<i64: 8, 16>}, {pipeline_mode = #tpu.pipeline_mode<synchronous>, transform_indices = @transform_1, window_bounds = array<i64: 8, 16>}, {transform_indices = @transform_2, window_bounds = array<i64: 64, 16>}, {transform_indices = @transform_3, window_bounds = array<i64: 4, 8, 8>}]} {
    %c0 = arith.constant 0 : index
    %c0_0 = arith.constant 0 : index
    %0 = vector.load %arg3[%c0, %c0_0] : memref<64x16xf32, #tpu.memory_space<vmem>>, vector<64x16xf32>
    %c0_1 = arith.constant 0 : index
    %c0_2 = arith.constant 0 : index
    %1 = vector.load %arg1[%c0_1, %c0_2] : memref<8x16xf32, #tpu.memory_space<vmem>>, vector<8x16xf32>
    %c0_3 = arith.constant 0 : index
    %c0_4 = arith.constant 0 : index
    %2 = vector.load %arg2[%c0_3, %c0_4] : memref<8x16xf32, #tpu.memory_space<vmem>>, vector<8x16xf32>
    %cst = arith.constant dense<0.000000e+00> : vector<64x8xf32>
    %3 = tpu.matmul %0, %2, %cst {dimension_numbers = #tpu.dot_dimension_numbers<[1], [1], [0], [0], [0, 0, 1, 0], [], []>} : vector<64x16xf32>, vector<8x16xf32>, vector<64x8xf32> -> vector<64x8xf32>
    %4 = vector.shape_cast %3 : vector<64x8xf32> to vector<4x16x8xf32>
    %5 = vector.shape_cast %1 : vector<8x16xf32> to vector<1x8x16xf32>
    %6 = vector.broadcast %5 : vector<1x8x16xf32> to vector<4x8x16xf32>
    %cst_5 = arith.constant dense<0.000000e+00> : vector<4x8x8xf32>
    %7 = tpu.matmul %6, %4, %cst_5 {dimension_numbers = #tpu.dot_dimension_numbers<[2], [1], [1], [2], [0, 0, 0, 1, 1, 2], [0], [0]>} : vector<4x8x16xf32>, vector<4x16x8xf32>, vector<4x8x8xf32> -> vector<4x8x8xf32>
    %c0_6 = arith.constant 0 : index
    %c0_7 = arith.constant 0 : index
    %c0_8 = arith.constant 0 : index
    %8 = vector.load %arg4[%c0_6, %c0_7, %c0_8] : memref<4x8x8xf32, #tpu.memory_space<vmem>>, vector<4x8x8xf32>
    tpu.vector_store %arg4[%c0_6, %c0_7, %c0_8], %7 {strides = array<i32>} : memref<4x8x8xf32, #tpu.memory_space<vmem>>, vector<4x8x8xf32>,
    return
  }
  func.func @transform_0(%arg0: i32) -> (i32, i32) {
    %c0_i32 = arith.constant 0 : i32
    %c0_i32_0 = arith.constant 0 : i32
    %c0_i32_1 = arith.constant 0 : i32
    return %c0_i32, %c0_i32_0 : i32, i32
  }
  func.func @transform_1(%arg0: i32) -> (i32, i32) {
    %c0_i32 = arith.constant 0 : i32
    %c0_i32_0 = arith.constant 0 : i32
    %c0_i32_1 = arith.constant 0 : i32
    return %c0_i32, %c0_i32_0 : i32, i32
  }
  func.func @transform_2(%arg0: i32) -> (i32, i32) {
    %c0_i32 = arith.constant 0 : i32
    %c0_i32_0 = arith.constant 0 : i32
    return %arg0, %c0_i32 : i32, i32
  }
  func.func @transform_3(%arg0: i32) -> (i32, i32, i32) {
    %c0_i32 = arith.constant 0 : i32
    %c0_i32_0 = arith.constant 0 : i32
    %c0_i32_1 = arith.constant 0 : i32
    return %arg0, %c0_i32, %c0_i32_0 : i32, i32, i32
  }
}

</mosaic_0001>

<bundles_post_ra>
// kernel: input_injection.1
= control target key start
LH: loop header
LB: loop body
LE: loop exit
PB: predicated region body
PF: predicated region fallthrough
CT: control target
= control target key end

     0   :  { %8 = vsyncpa [#allocation3], 0  ;;  %s1158_s0 = inlined_call_operand.vmem [shape: f32[8,16], index: 0, kind: input, shape index: {}]   ;;  %s1159_s1 = inlined_call_operand.vmem [shape: f32[8,16], index: 1, kind: input, shape index: {}]   ;;  %s1160_s2 = inlined_call_operand.hbm [shape: f32[128,16], index: 2, kind: input, shape index: {}]   ;;  %s1161_s3 = inlined_call_operand.hbm [shape: f32[8,8,8], index: 3, kind: output, shape index: {}]  }
   0x1   :  { %10 = vsyncpa [#allocation3 + $0x1], 0 }
   0x2   :  { %11 = vsyncpa [#allocation4], 0 }
   0x3   :  { %13 = vsyncpa [#allocation4 + $0x1], 0  ;;  %s975_s12 = smov 0   ;;  %s977_s13 = smov 0  }
   0x4   :  { %s979_s14 = smov 0   ;;  %s981_s15 = smov 0  }
   0x5 LB: > { %s996_s16 = sadd.s32 4294967295, %s945_s15   ;;  %s709_s17 = sadd.s32 4294967294, %s945_s15   ;;  %s945_s15 = sphi %s981_s15, %s1176_s15   ;;  %s941_s14 = sphi %s979_s14, %s1175_s14   ;;  %s937_s13 = sphi %s977_s13, %s1174_s13   ;;  %s933_s12 = sphi %s975_s12, %s1173_s12  }
   0x6   : > { %s1000_s18 = sadd.s32 1, %s945_s15   ;;  %s68_s19 = sadd.s32 1, %s941_s14 }
   0x7   : > { %s65_s20 = ssub.s32 %s945_s15, %s1000_s18  ;;  %p75_p0 = scmp.ne.s32.totalorder %s941_s14, %s937_s13 }
   0x8   : > { %p66_p1 = scmp.eq.s32.totalorder %s65_s20, 0  ;;  %p76_p2 = scmp.eq.s32.totalorder %s945_s15, 0 }
   0x9   : > { %p81_p3 = scmp.ne.s32.totalorder %s937_s13, %s933_s12  ;;  %p82_p4 = scmp.eq.s32.totalorder %s996_s16, 0 }
   0xa   : > { %s1012_s21 = scalar_select %p66_p1, %s941_s14, %s68_s19  }
   0xb   : > { %p1014_p5 = por %p76_p2, %p75_p0  ;;  %p1018_p6 = por %p82_p4, %p81_p3 }
   0xc   : > { %p105_p7 = scmp.eq.s32.totalorder %s996_s16, 1  ;;  %p111_p8 = scmp.eq.s32.totalorder %s709_s17, 1 }
   0xd   : > { %s1165_s23 = scalar_select %p1018_p6, 1, 0 }
   0xe   : > { %p813_p10 = scmp.lt.s32.totalorder %s945_s15, 2  ;;  %p1025_p11 = por %p105_p7, %p75_p0 }
   0xf   : > { %p1029_p12 = por %p111_p8, %p81_p3  ;;  %s137_s26 = sand.u32 1, %s941_s14  }
  0x10   : > { %s1166_s24 = scalar_select %p1025_p11, 1, 0 }
  0x11   : > { %s1167_s25 = scalar_select %p1029_p12, 1, 0 }
  0x12   : > { %s736_s27 = sshll.u32 %s945_s15, 10  ;;  %s712_s28 = sshll.u32 %s137_s26, 6 }
  0x13   : > { %s1038_s4 = scalar_lea.hbm %s1160_s2, %s736_s27  ;;  %s141_s5 = scalar_lea.vmem [#allocation2], %s712_s28 }
  0x14   : > { %s148_s6 = sshll.u32 %s141_s5, 4  ;;  %p1042_p13 = pnand %p813_p10, %p1014_p5  ;;  %s1046_s6 = int_to_ptr.vmem [resolvable:$true] %s148_s6 }
  0x15   : > { %s1048_s8 = scalar_lea.sflag [#allocation3], %s137_s26  ;;  %s853_s9 = scalar_lea.hbm %s1038_s4, 1024 }
  0x16   : > { %p854_p0 = scmp.ne.s32.totalorder %s1038_s4, %s853_s9  ;;  %p855_p1 = pneg %p1042_p13 }
  0x17   : > { %s858_s17 = scalar_lea.hbm %s1160_s2, 2048  ;;  %p859_p4 = scmp.lt.s32.totalorder %s1038_s4, %s1160_s2 }
  0x18   : > { %p856_p2 = pnand %p855_p1, %p854_p0  ;;  %p860_p5 = scmp.lt.s32.totalorder %s858_s17, %s853_s9 }
  0x1a   : > { %p857_p3 = pneg %p856_p2  ;;  %p861_p7 = por %p860_p5, %p859_p4 }
  0x1c   : > { %p862_p8 = pnand %p861_p7, %p857_p3 }
  0x1e   : > { %865 = shalt.err (!%p862_p8)
}
  0x1f   : > { %s866_s22 = scalar_lea.vmem %s1046_s6, 1024  ;;  %s947_s26 = smov [#allocation2]  }
  0x20   : > { %p867_p10 = scmp.ne.s32.totalorder %s1046_s6, %s866_s22  ;;  %s871_s27 = sshll.u32 %s947_s26, 4  ;;  %s872_s27 = int_to_ptr.vmem [resolvable:$false] %s871_s27 }
  0x21   : > { %s873_s28 = scalar_lea.vmem %s872_s27, 2048  ;;  %p874_p2 = scmp.lt.s32.totalorder %s1046_s6, %s872_s27 }
  0x22   : > { %p869_p9 = pnand %p867_p10, %p855_p1  ;;  %p875_p12 = scmp.lt.s32.totalorder %s873_s28, %s866_s22 }
  0x24   : > { %p870_p0 = pneg %p869_p9  ;;  %p876_p11 = por %p875_p12, %p874_p2 }
  0x26   : > { %p877_p6 = pnand %p876_p11, %p870_p0 }
  0x28   : > { %880 = shalt.err (!%p877_p6)
}
  0x29   : > { %s948_s29 = smov 128   ;;  %s949_s30 = smov 8  }
  0x2a   : > { %808 = dma.hbm_to_vmem [thread:$0]  (!%p1042_p13), %s1038_s4, 1024, %s1046_s6, %s1048_s8, %s948_s29, %s948_s29, %s949_s30  }
  0x2b   : > { %p715_p9 = scmp.ge.s32.totalorder %s945_s15, 1  ;;  %p156_p1 = scmp.lt.s32.totalorder %s945_s15, 3 }
  0x2d   : > { %p157_p3 = pnand %p715_p9, %p156_p1 }
  0x2e   : > { %s1072_s5 = sand.u32 (!%p157_p3), 1, %s937_s13   ;;  %p1169_p6 = scmp.ne.s32.totalorder (!%p157_p3), %s1165_s23, 0 }
  0x2f   : > { %160 = sbr.rel (%p157_p3) target bundleno = 474 (0x1da), region = 32  ;;  %s716_s9 = sshll.u32 (!%p157_p3), %s1072_s5, 6 }
  0x30   : > { %s163_s10 = scalar_lea.sflag (!%p157_p3), [#allocation3], %s1072_s5  ;;  %s166_s11 = scalar_lea.vmem (!%p157_p3), [#allocation2], %s716_s9 }
  0x34   : > { %924 = dma.done.wait (%p1169_p6), %s163_s10, 1024  }
  0x35   : > { %926 = vsyncadd (%p1169_p6), %s163_s10, 4294966272  ;;  %vm201_vm0 = vcmask 130048   ;;  %v200_v0 = vld [vmem:[%s1159_s1] sm:$0xff]  ;;  %v192_v2 = vld [vmem:[%s166_s11 + $0x8] sm:$0xff]  ;;  %v950_v9 = vmov 0.0   ;;  %vm951_vm1 = vmmov 0  }
  0x36   : > { %v191_v1 = vld [vmem:[%s166_s11] sm:$0xff]  ;;  %759 = vmatprep.subr.msk.mxu0 %vm201_vm0, %v200_v0  ;;  %v193_v3 = vld [vmem:[%s166_s11 + $0x10] sm:$0xff]  ;;  %v194_v4 = vld [vmem:[%s166_s11 + $0x18] sm:$0xff]  ;;  %773 = vmatprep.subr.mxu1 %v950_v9  ;;  %s717_s8 = sshll.u32 %s1072_s5, 5  ;;  %vm617_vm2 = vcmask 64512   ;;  %s737_s20 = sshll.u32 %s996_s16, 9 }
  0x37   : > { %761 = vmatprep.mubr.msk.f32.mxu0 %vm201_vm0, %v191_v1  ;;  %760 = vmatpush3.xpose.msk.msra.mxu0 %vm201_vm0, %v200_v0  ;;  %v195_v5 = vld [vmem:[%s166_s11 + $0x20] sm:$0xff]  ;;  %v196_v6 = vld [vmem:[%s166_s11 + $0x28] sm:$0xff]  ;;  %v197_v7 = vld [vmem:[%s166_s11 + $0x30] sm:$0xff]  ;;  %s188_s17 = scalar_lea.vmem [#allocation5], %s717_s8  ;;  %s1114_s27 = scalar_lea.hbm %s1161_s3, %s737_s20 }
  0x38   : > { %v198_v8 = vld [vmem:[%s166_s11 + $0x38] sm:$0xff]  ;;  %777 = vmatprep.mubr.msk.f32.mxu1 %vm951_vm1, %v950_v9  ;;  %v199_v11 = vld [vmem:[%s1158_s0] sm:$0xff]  ;;  %s636_s19 = sshll.u32 %s188_s17, 4  ;;  %s623_s28 = scalar_lea.sflag [#allocation4], %s1072_s5  ;;  %s1108_s19 = int_to_ptr.vmem [resolvable:$true] %s636_s19 }
  0x39   : > { %s881_s16 = scalar_lea.vmem %s1108_s19, 512  ;;  %p1170_p12 = scmp.ne.s32.totalorder %s1166_s24, 0 }
  0x3a   : > { %762 = vmatmul.mubr.msk.f32.vlgmr.msra.gmra.mxu0 %vm201_vm0, %v192_v2  ;;  %p882_p11 = scmp.ne.s32.totalorder %s1108_s19, %s881_s16  ;;  %s952_s29 = smov [#allocation5]  }
  0x3b   : > { %764 = vmatprep.mubr.msk.f32.mxu0 %vm201_vm0, %v193_v3  ;;  %s885_s30 = sshll.u32 %s952_s29, 4  ;;  %s886_s30 = int_to_ptr.vmem [resolvable:$false] %s885_s30 }
  0x3c   : > { %p883_p13 = pnand %p882_p11, %p1170_p12  ;;  %s887_s9 = scalar_lea.vmem %s886_s30, 1024 }
  0x3d   : > { %p888_p5 = scmp.lt.s32.totalorder %s1108_s19, %s886_s30  ;;  %p889_p7 = scmp.lt.s32.totalorder %s887_s9, %s881_s16 }
  0x3e   : > { %765 = vmatmul.mubr.msk.f32.gmra.mxu0 %vm201_vm0, %v194_v4  ;;  %p884_p4 = pneg %p883_p13 }
  0x3f   : > { %767 = vmatprep.mubr.msk.f32.mxu0 %vm201_vm0, %v195_v5  ;;  %p890_p8 = por %p889_p7, %p888_p5 }
  0x41   : > { %p891_p10 = pnand %p890_p8, %p884_p4 }
  0x42   : > { %768 = vmatmul.mubr.msk.f32.gmra.mxu0 %vm201_vm0, %v196_v6 }
  0x43   : > { %770 = vmatprep.mubr.msk.f32.mxu0 %vm201_vm0, %v197_v7 }
  0x46   : > { %771 = vmatmul.mubr.msk.f32.gmra.mxu0 %vm201_vm0, %v198_v8 }
  0xfa   : > { %v763_v10 = vpop.f32.mrf.mxu0 }
  0xfb   : > { %774 = vmatpush3.msra.mxu1 %v763_v10 }
  0xfc   : > { %v295_v12 = vpop.f32.mrf.mxu0  ;;  %775 = vmatprep.subr.mxu1 %v950_v9 }
  0xfd   : > { %776 = vmatpush3.msra.mxu1 %v295_v12 }
  0xfe   : > { %v766_v13 = vpop.f32.mrf.mxu0  ;;  %778 = vmatmul.mubr.msk.f32.vlgmr.msra.gmra.mxu1 %vm201_vm0, %v199_v11  ;;  %780 = vmatprep.subr.mxu1 %v950_v9 }
  0xff   : > { %781 = vmatpush3.msra.mxu1 %v766_v13  ;;  %784 = vmatprep.mubr.msk.f32.mxu1 %vm951_vm1, %v950_v9 }
 0x100   : > { %v305_v14 = vpop.f32.mrf.mxu0  ;;  %782 = vmatprep.subr.mxu1 %v950_v9 }
 0x101   : > { %783 = vmatpush3.msra.mxu1 %v305_v14 }
 0x102   : > { %v769_v15 = vpop.f32.mrf.mxu0  ;;  %785 = vmatmul.mubr.msk.f32.vlgmr.msra.gmra.mxu1 %vm201_vm0, %v199_v11  ;;  %787 = vmatprep.subr.mxu1 %v950_v9 }
 0x103   : > { %788 = vmatpush3.msra.mxu1 %v769_v15  ;;  %791 = vmatprep.mubr.msk.f32.mxu1 %vm951_vm1, %v950_v9 }
 0x104   : > { %v315_v16 = vpop.f32.mrf.mxu0  ;;  %789 = vmatprep.subr.mxu1 %v950_v9 }
 0x105   : > { %790 = vmatpush3.msra.mxu1 %v315_v16 }
 0x106   : > { %v772_v17 = vpop.f32.mrf.mxu0  ;;  %792 = vmatmul.mubr.msk.f32.vlgmr.msra.gmra.mxu1 %vm201_vm0, %v199_v11  ;;  %794 = vmatprep.subr.mxu1 %v950_v9 }
 0x107   : > { %795 = vmatpush3.msra.mxu1 %v772_v17  ;;  %798 = vmatprep.mubr.msk.f32.mxu1 %vm951_vm1, %v950_v9 }
 0x108   : > { %v325_v18 = vpop.f32.mrf.mxu0  ;;  %796 = vmatprep.subr.mxu1 %v950_v9 }
 0x109   : > { %797 = vmatpush3.msra.mxu1 %v325_v18 }
 0x10a   : > { %799 = vmatmul.mubr.msk.f32.vlgmr.msra.gmra.mxu1 %vm201_vm0, %v199_v11 }
 0x1be   : > { %v403_v19 = vpop.f32.mrf.mxu1 }
 0x1bf   : > { %618 = vst.msk [vmem:[%s188_s17] sm:$0xff] %vm617_vm2, %v403_v19 }
 0x1c0   : > { %v779_v20 = vpop.f32.mrf.mxu1 }
 0x1c2   : > { %v473_v21 = vpop.f32.mrf.mxu1 }
 0x1c3   : > { %619 = vst.msk [vmem:[%s188_s17 + $0x8] sm:$0xff] %vm617_vm2, %v473_v21 }
 0x1c4   : > { %v786_v22 = vpop.f32.mrf.mxu1 }
 0x1c6   : > { %v543_v23 = vpop.f32.mrf.mxu1 }
 0x1c7   : > { %620 = vst.msk [vmem:[%s188_s17 + $0x10] sm:$0xff] %vm617_vm2, %v543_v23 }
 0x1c8   : > { %v793_v24 = vpop.f32.mrf.mxu1 }
 0x1ca   : > { %v613_v25 = vpop.f32.mrf.mxu1 }
 0x1cb   : > { %621 = vst.msk [vmem:[%s188_s17 + $0x18] sm:$0xff] %vm617_vm2, %v613_v25 }
 0x1cc   : > { %v800_v26 = vpop.f32.mrf.mxu1 }
 0x1cd   : > { %894 = shalt.err (!%p891_p10)
}
 0x1ce   : > { %s895_s10 = scalar_lea.hbm %s1114_s27, 512  ;;  %s899_s6 = scalar_lea.hbm %s1161_s3, 1024 }
 0x1cf   : > { %p896_p0 = scmp.ne.s32.totalorder %s1114_s27, %s895_s10  ;;  %p900_p1 = scmp.lt.s32.totalorder %s1114_s27, %s1161_s3 }
 0x1d0   : > { %p901_p3 = scmp.lt.s32.totalorder %s899_s6, %s895_s10 }
 0x1d1   : > { %p897_p2 = pnand %p896_p0, %p1170_p12 }
 0x1d2   : > { %p902_p6 = por %p901_p3, %p900_p1 }
 0x1d3   : > { %p898_p9 = pneg %p897_p2 }
 0x1d5   : > { %p903_p11 = pnand %p902_p6, %p898_p9 }
 0x1d7   : > { %906 = shalt.err (!%p903_p11)
}
 0x1d8   : > { %s953_s8 = smov 128   ;;  %s954_s17 = smov 8  }
 0x1d9   : > { %803 = dma.vmem_to_hbm [thread:$0]  (%p1170_p12), %s1108_s19, 512, %s1114_s27, %s623_s28, %s953_s8, %s953_s8, %s954_s17  }
 0x1da PF: > { %s651_s20 = sand.u32 1, %s933_s12   ;;  %p1171_p13 = scmp.ne.s32.totalorder %s1167_s25, 0 }
 0x1db   : > { %p1172_p4 = scmp.ge.s32.totalorder %s945_s15, 2  ;;  %s652_s22 = scalar_lea.sflag [#allocation4], %s651_s20 }
 0x1dd   : > { %p810_p5 = pnand %p1172_p4, %p1171_p13 }
 0x1df   : > { %p811_p7 = pneg %p810_p5 }
 0x1e1   : > { %928 = dma.done.wait (%p811_p7), %s652_s22, 512  }
 0x1e2   : > { %930 = vsyncadd (%p811_p7), %s652_s22, 4294966784  ;;  %p16_p8 = scmp.ge.s32.totalorder %s1000_s18, 4   ;;  %s1173_s12 = smov %s937_s13 }
 0x1e3   : > { %s1174_s13 = smov %s941_s14  ;;  %s1175_s14 = smov %s1012_s21 }
 0x1e4   : > { %s1176_s15 = smov %s1000_s18  ;;  %18 = sbr.rel (!%p16_p8) target bundleno = 5 (0x5), region = 77 }
 0x1e9   :  { %657 = vsyncpa [#allocation3], 1 }
 0x1ea   :  { %659 = vsyncpa [#allocation3 + $0x1], 1 }
 0x1eb   :  { %660 = vsyncpa [#allocation4], 1 }
 0x1ec   :  { %662 = vsyncpa [#allocation4 + $0x1], 1 }

</bundles_post_ra>
